<compile_context>
chip_gen: v6e
topology: v6e:2x2x1
jax: 0.10.0
libtpu: 0.0.40
codegen_flags: <defaults>
</compile_context>

<pallas_src>
import jax
import jax.numpy as jnp
import numpy as np
from jax import lax
from jax.experimental import pallas as pl
from jax.experimental.pallas import tpu as pltpu


def _round_up(a, b):
    return (a + b - 1) // b * b


# ---------------------------------------------------------------------------
# Kernels
# ---------------------------------------------------------------------------
def _adown_fused_kernel(p_ref, w_ref, b_ref, o_ref):
    """One block-diagonal matmul covering both branches, +bias, SiLU,
    single lane-dense store of the concatenated output."""
    y = jnp.dot(p_ref[...], w_ref[...], preferred_element_type=jnp.float32)
    y = y + b_ref[...]
    y = y * jax.nn.sigmoid(y)                     # SiLU
    o_ref[...] = y.astype(o_ref.dtype)


def _adown_split_kernel(p1_ref, p2_ref, w1_ref, w2_ref, b1_ref, b2_ref,
                        o1_ref, o2_ref):
    """Large-c path: two matmuls, two separate lane-dense outputs."""
    y1 = jnp.dot(p1_ref[...], w1_ref[...], preferred_element_type=jnp.float32)
    y1 = y1 + b1_ref[...]
    o1_ref[...] = (y1 * jax.nn.sigmoid(y1)).astype(o1_ref.dtype)

    y2 = jnp.dot(p2_ref[...], w2_ref[...], preferred_element_type=jnp.float32)
    y2 = y2 + b2_ref[...]
    o2_ref[...] = (y2 * jax.nn.sigmoid(y2)).astype(o2_ref.dtype)


# ---------------------------------------------------------------------------
# Wrapper
# ---------------------------------------------------------------------------
def adown_forward(x_nchw, params, min_spatial_size=2):
    """Pallas implementation of ADown.forward (NCHW in, NCHW out)."""
    N, C1, H, W = x_nchw.shape
    # pass-through conditions (static shape checks, Python level)
    if W <= min_spatial_size or H <= min_spatial_size:
        return x_nchw
    Ho, Wo = (H + 1) // 2, (W + 1) // 2
    if Ho < min_spatial_size or Wo < min_spatial_size:
        return x_nchw

    w1, w2 = params["w1"], params["w2"]           # (c,C1,3,3), (c,C1,1,1)
    bn1, bn2 = params["bn1"], params["bn2"]
    c = w1.shape[0]
    eps = 1e-5
    s1 = bn1["gamma"] * lax.rsqrt(bn1["var"] + eps)
    b1 = bn1["beta"] - bn1["mean"] * s1
    s2 = bn2["gamma"] * lax.rsqrt(bn2["var"] + eps)
    b2 = bn2["beta"] - bn2["mean"] * s2

    compute_dtype = jnp.bfloat16                  # MXU-native operand dtype
    out_dtype = x_nchw.dtype

    x = jnp.transpose(x_nchw, (0, 2, 3, 1)).astype(compute_dtype)  # NHWC bf16
    M = N * Ho * Wo

    # ---- branch-2 pre-reduction: 3x3/s2 max pool with -inf padding --------
    neg_inf = jnp.asarray(-jnp.inf, dtype=compute_dtype)
    pooled = lax.reduce_window(
        x, neg_inf, lax.max,
        window_dimensions=(1, 3, 3, 1), window_strides=(1, 2, 2, 1),
        padding=((0, 0), (1, 1), (1, 1), (0, 0)))          # (N,Ho,Wo,C1)
    pooled2d = pooled.reshape(M, C1)

    # ---- branch-1 patches: stride-2 3x3 im2col with zero padding ----------
    xp = jnp.pad(x, ((0, 0), (1, 1), (1, 1), (0, 0)))
    taps = [xp[:, di:di + 2 * Ho - 1:2, dj:dj + 2 * Wo - 1:2, :]
            for di in range(3) for dj in range(3)]          # 9 x (N,Ho,Wo,C1)
    p1 = jnp.stack(taps, axis=3).reshape(M, 9 * C1)         # (M, 9*C1) bf16

    # PyTorch OIHW -> (kh*kw*cin, cout) / (cin, cout); BN scale folded in.
    w1m = jnp.transpose(w1, (2, 3, 1, 0)).reshape(9 * C1, c) * s1[None, :]
    w2m = jnp.transpose(w2, (2, 3, 1, 0)).reshape(C1, c) * s2[None, :]

    # ---- tiling: row tile from a VMEM budget, M padded to a multiple ------
    in_row_bytes = 10 * C1 * 2                    # bf16 patches per row
    out_row_bytes = 2 * c * out_dtype.itemsize
    budget = 16 * 1024 * 1024                     # double-buffered block budget
    TM = 1024
    while TM > 64 and 2 * TM * (in_row_bytes + out_row_bytes) > budget:
        TM //= 2
    TM = min(TM, _round_up(M, 8))
    Mp = _round_up(M, TM)
    pad = Mp - M
    grid = (Mp // TM,)

    compiler_params = pltpu.CompilerParams(
        dimension_semantics=("parallel",),
        vmem_limit_bytes=48 * 1024 * 1024)

    fused = (2 * c) <= 256                        # small c: fill the MXU width
    if fused:
        patches = jnp.concatenate([p1, pooled2d], axis=1)   # (M, 10*C1)
        if pad:
            patches = jnp.pad(patches, ((0, pad), (0, 0)))
        w_blk = jnp.concatenate(
            [jnp.concatenate([w1m, jnp.zeros((9 * C1, c), w1m.dtype)], axis=1),
             jnp.concatenate([jnp.zeros((C1, c), w2m.dtype), w2m], axis=1)],
            axis=0)                                          # (10*C1, 2c)
        bias = jnp.concatenate([b1, b2]).reshape(1, 2 * c).astype(jnp.float32)

        out_flat = pl.pallas_call(
            _adown_fused_kernel,
            out_shape=jax.ShapeDtypeStruct((Mp, 2 * c), out_dtype),
            grid_spec=pltpu.PrefetchScalarGridSpec(
                num_scalar_prefetch=0,
                grid=grid,
                in_specs=[
                    pl.BlockSpec((TM, 10 * C1), lambda i: (i, 0)),
                    pl.BlockSpec((10 * C1, 2 * c), lambda i: (0, 0)),
                    pl.BlockSpec((1, 2 * c), lambda i: (0, 0)),
                ],
                out_specs=pl.BlockSpec((TM, 2 * c), lambda i: (i, 0)),
            ),
            compiler_params=compiler_params,
        )(patches.astype(compute_dtype), w_blk.astype(compute_dtype), bias)
    else:
        if pad:
            p1 = jnp.pad(p1, ((0, pad), (0, 0)))
            pooled2d = jnp.pad(pooled2d, ((0, pad), (0, 0)))
        b1r = b1.reshape(1, c).astype(jnp.float32)
        b2r = b2.reshape(1, c).astype(jnp.float32)

        o1, o2 = pl.pallas_call(
            _adown_split_kernel,
            out_shape=(jax.ShapeDtypeStruct((Mp, c), out_dtype),
                       jax.ShapeDtypeStruct((Mp, c), out_dtype)),
            grid_spec=pltpu.PrefetchScalarGridSpec(
                num_scalar_prefetch=0,
                grid=grid,
                in_specs=[
                    pl.BlockSpec((TM, 9 * C1), lambda i: (i, 0)),
                    pl.BlockSpec((TM, C1), lambda i: (i, 0)),
                    pl.BlockSpec((9 * C1, c), lambda i: (0, 0)),
                    pl.BlockSpec((C1, c), lambda i: (0, 0)),
                    pl.BlockSpec((1, c), lambda i: (0, 0)),
                    pl.BlockSpec((1, c), lambda i: (0, 0)),
                ],
                out_specs=[pl.BlockSpec((TM, c), lambda i: (i, 0)),
                           pl.BlockSpec((TM, c), lambda i: (i, 0))],
            ),
            compiler_params=compiler_params,
        )(p1.astype(compute_dtype), pooled2d.astype(compute_dtype),
          w1m.astype(compute_dtype), w2m.astype(compute_dtype), b1r, b2r)
        out_flat = jnp.concatenate([o1, o2], axis=1)

    if pad:
        out_flat = out_flat[:M]
    out = out_flat.reshape(N, Ho, Wo, 2 * c)
    return jnp.transpose(out, (0, 3, 1, 2))       # back to NCHW (module spec)


# ---------------------------------------------------------------------------
# Pure-JAX reference (eval-mode, f32) and test harness
# ---------------------------------------------------------------------------
def _reference(x_nchw, params):
    w1, w2 = params["w1"], params["w2"]
    bn1, bn2 = params["bn1"], params["bn2"]
    eps = 1e-5
    s1 = bn1["gamma"] / jnp.sqrt(bn1["var"] + eps)
    b1 = bn1["beta"] - bn1["mean"] * s1
    s2 = bn2["gamma"] / jnp.sqrt(bn2["var"] + eps)
    b2 = bn2["beta"] - bn2["mean"] * s2

    y1 = lax.conv_general_dilated(
        x_nchw, w1, window_strides=(2, 2), padding=((1, 1), (1, 1)),
        dimension_numbers=("NCHW", "OIHW", "NCHW"))
    y1 = y1 * s1[None, :, None, None] + b1[None, :, None, None]
    y1 = y1 * jax.nn.sigmoid(y1)

    pooled = lax.reduce_window(
        x_nchw, -jnp.inf, lax.max,
        window_dimensions=(1, 1, 3, 3), window_strides=(1, 1, 2, 2),
        padding=((0, 0), (0, 0), (1, 1), (1, 1)))
    y2 = lax.conv_general_dilated(
        pooled, w2, window_strides=(1, 1), padding=((0, 0), (0, 0)),
        dimension_numbers=("NCHW", "OIHW", "NCHW"))
    y2 = y2 * s2[None, :, None, None] + b2[None, :, None, None]
    y2 = y2 * jax.nn.sigmoid(y2)
    return jnp.concatenate([y1, y2], axis=1)


def init_params(key, c1, c2):
    c = c2 // 2
    ks = jax.random.split(key, 10)
    return {
        "w1": 0.1 * jax.random.normal(ks[0], (c, c1, 3, 3), jnp.float32),
        "w2": 0.1 * jax.random.normal(ks[1], (c, c1, 1, 1), jnp.float32),
        "bn1": {
            "gamma": 1.0 + 0.1 * jax.random.normal(ks[2], (c,), jnp.float32),
            "beta": 0.1 * jax.random.normal(ks[3], (c,), jnp.float32),
            "mean": 0.1 * jax.random.normal(ks[4], (c,), jnp.float32),
            "var": jnp.abs(jax.random.normal(ks[5], (c,), jnp.float32)) + 0.5,
        },
        "bn2": {
            "gamma": 1.0 + 0.1 * jax.random.normal(ks[6], (c,), jnp.float32),
            "beta": 0.1 * jax.random.normal(ks[7], (c,), jnp.float32),
            "mean": 0.1 * jax.random.normal(ks[8], (c,), jnp.float32),
            "var": jnp.abs(jax.random.normal(ks[9], (c,), jnp.float32)) + 0.5,
        },
    }


if __name__ == "__main__":
    key = jax.random.PRNGKey(0)
    k_x, k_p = jax.random.split(key)

    N, C1, H, W = 2, 4, 16, 16     # input (NCHW, like PyTorch)
    C2 = 8                         # c = C2 // 2 = 4
    x = jax.random.normal(k_x, (N, C1, H, W), jnp.float32)
    params = init_params(k_p, C1, C2)

    fwd = jax.jit(adown_forward)
    out = jax.block_until_ready(fwd(x, params))

    assert out.shape == (N, C2, (H + 1) // 2, (W + 1) // 2), out.shape

    ref = jax.block_until_ready(_reference(x, params))
    # bf16 MXU operands -> compare against the f32 reference at bf16 tolerance
    np.testing.assert_allclose(np.asarray(out), np.asarray(ref),
                               rtol=2e-2, atol=2e-2)

    print("KERNEL_OK")
</pallas_src>

<mosaic_0001>
module attributes {stable_mosaic.version = 11 : i64} {
  func.func @_adown_fused_kernel(%arg0: i32, %arg1: memref<128x40xbf16, #tpu.memory_space<vmem>>, %arg2: memref<40x8xbf16, #tpu.memory_space<vmem>>, %arg3: memref<1x8xf32, #tpu.memory_space<vmem>>, %arg4: memref<128x8xf32, #tpu.memory_space<vmem>>) attributes {dimension_semantics = [#tpu.dimension_semantics<parallel>], iteration_bounds = array<i64: 1>, scalar_prefetch = 0 : i64, scratch_operands = 0 : i64, tpu.core_type = #tpu.core_type<tc>, window_params = [{transform_indices = @transform_0, window_bounds = array<i64: 128, 40>}, {pipeline_mode = #tpu.pipeline_mode<synchronous>, transform_indices = @transform_1, window_bounds = array<i64: 40, 8>}, {pipeline_mode = #tpu.pipeline_mode<synchronous>, transform_indices = @transform_2, window_bounds = array<i64: 1, 8>}, {transform_indices = @transform_3, window_bounds = array<i64: 128, 8>}]} {
    %c0 = arith.constant 0 : index
    %c0_0 = arith.constant 0 : index
    %0 = vector.load %arg1[%c0, %c0_0] : memref<128x40xbf16, #tpu.memory_space<vmem>>, vector<128x40xbf16>
    %c0_1 = arith.constant 0 : index
    %c0_2 = arith.constant 0 : index
    %1 = vector.load %arg2[%c0_1, %c0_2] : memref<40x8xbf16, #tpu.memory_space<vmem>>, vector<40x8xbf16>
    %cst = arith.constant dense<0.000000e+00> : vector<128x8xf32>
    %2 = tpu.matmul %0, %1, %cst {dimension_numbers = #tpu.dot_dimension_numbers<[1], [0], [0], [1], [0, 0, 1, 1], [], []>} : vector<128x40xbf16>, vector<40x8xbf16>, vector<128x8xf32> -> vector<128x8xf32>
    %c0_3 = arith.constant 0 : index
    %c0_4 = arith.constant 0 : index
    %3 = vector.load %arg3[%c0_3, %c0_4] : memref<1x8xf32, #tpu.memory_space<vmem>>, vector<1x8xf32>
    %4 = vector.broadcast %3 : vector<1x8xf32> to vector<128x8xf32>
    %5 = arith.addf %2, %4 : vector<128x8xf32>
    %6 = arith.negf %5 : vector<128x8xf32>
    %7 = math.exp %6 : vector<128x8xf32>
    %cst_5 = arith.constant 1.000000e+00 : f32
    %8 = vector.broadcast %cst_5 : f32 to vector<128x8xf32>
    %9 = arith.addf %8, %7 : vector<128x8xf32>
    %10 = arith.divf %8, %9 : vector<128x8xf32>
    %11 = arith.mulf %5, %10 : vector<128x8xf32>
    %c0_6 = arith.constant 0 : index
    %c0_7 = arith.constant 0 : index
    %12 = vector.load %arg4[%c0_6, %c0_7] : memref<128x8xf32, #tpu.memory_space<vmem>>, vector<128x8xf32>
    tpu.vector_store %arg4[%c0_6, %c0_7], %11 {strides = array<i32>} : memref<128x8xf32, #tpu.memory_space<vmem>>, vector<128x8xf32>,
    return
  }
  func.func @transform_0(%arg0: i32) -> (i32, i32) {
    %c0_i32 = arith.constant 0 : i32
    %c0_i32_0 = arith.constant 0 : i32
    return %arg0, %c0_i32 : i32, i32
  }
  func.func @transform_1(%arg0: i32) -> (i32, i32) {
    %c0_i32 = arith.constant 0 : i32
    %c0_i32_0 = arith.constant 0 : i32
    %c0_i32_1 = arith.constant 0 : i32
    return %c0_i32, %c0_i32_0 : i32, i32
  }
  func.func @transform_2(%arg0: i32) -> (i32, i32) {
    %c0_i32 = arith.constant 0 : i32
    %c0_i32_0 = arith.constant 0 : i32
    %c0_i32_1 = arith.constant 0 : i32
    return %c0_i32, %c0_i32_0 : i32, i32
  }
  func.func @transform_3(%arg0: i32) -> (i32, i32) {
    %c0_i32 = arith.constant 0 : i32
    %c0_i32_0 = arith.constant 0 : i32
    return %arg0, %c0_i32 : i32, i32
  }
}

</mosaic_0001>

<bundles_post_ra>
// kernel: adown_forward.1
= control target key start
LH: loop header
LB: loop body
LE: loop exit
PB: predicated region body
PF: predicated region fallthrough
CT: control target
= control target key end

     0   :  { %vm123_vm0 = vcmask 1043456   ;;  %vm98_vm1 = vcmask 326656   ;;  %vm336_vm2 = vcmask 64512   ;;  %s701_s1 = inlined_call_operand.vmem [shape: bf16[40,8], index: 1, kind: input, shape index: {}]   ;;  %s702_s0 = inlined_call_operand.vmem [shape: bf16[128,40], index: 0, kind: input, shape index: {}]   ;;  %s703_s2 = inlined_call_operand.vmem [shape: f32[1,8], index: 2, kind: input, shape index: {}]   ;;  %s704_s3 = inlined_call_operand.vmem [shape: f32[128,8], index: 3, kind: output, shape index: {}]  }
   0x1   :  { %v434_v0 = vld [vmem:[%s701_s1 + $0x10] ss:$0 sps:$4 sm:$0xff]   ;;  %v435_v1 = vld [vmem:[%s701_s1 + $0x8] sm:$0xff]   ;;  %v436_v3 = vld [vmem:[%s701_s1] sm:$0xff]  }
   0x2   :  { %432 = vmatprep.subr.msk.bf16.mxu0 %vm123_vm0, %v434_v0  ;;  %433 = vmatprep.subr.msk.bf16.mxu1 %vm123_vm0, %v434_v0  ;;  %v125_v2 = vsel %vm123_vm0, %v434_v0, 0  ;;  %v437_v4 = vld [vmem:[%s702_s0] sm:$0xff]   ;;  %v439_v6 = vld [vmem:[%s702_s0 + $0x8] sm:$0xff]   ;;  %v441_v8 = vld [vmem:[%s702_s0 + $0x10] sm:$0xff]  }
   0x3   :  { %405 = vmatpush3.bf16.msra.mxu0 %v125_v2  ;;  %429 = vmatpush3.bf16.msra.mxu1 %v125_v2  ;;  %v438_v5 = vld [vmem:[%s702_s0 + $0x20] sm:$0xff]   ;;  %v440_v7 = vld [vmem:[%s702_s0 + $0x28] sm:$0xff]   ;;  %v442_v9 = vld [vmem:[%s702_s0 + $0x30] sm:$0xff]  }
   0x4   :  { %406 = vmatprep.subr.bf16.mxu0 %v435_v1  ;;  %427 = vmatprep.subr.bf16.mxu1 %v435_v1  ;;  %v443_v10 = vld [vmem:[%s702_s0 + $0x18] sm:$0xff]   ;;  %v357_v12 = vld [vmem:[%s703_s2] ss:$0 sm:$0xff] }
   0x5   :  { %410 = vmatprep.mubr.msk.bf16.mxu0 %vm98_vm1, %v437_v4  ;;  %418 = vmatprep.mubr.msk.bf16.mxu1 %vm98_vm1, %v438_v5  ;;  %v444_v11 = vld [vmem:[%s702_s0 + $0x38] sm:$0xff]  }
   0x7   :  { %407 = vmatpush3.bf16.msra.mxu0 %v435_v1  ;;  %430 = vmatpush3.bf16.msra.mxu1 %v435_v1 }
   0x8   :  { %408 = vmatprep.subr.bf16.mxu0 %v436_v3  ;;  %428 = vmatprep.subr.bf16.mxu1 %v436_v3 }
   0xb   :  { %409 = vmatpush3.bf16.msra.mxu0 %v436_v3  ;;  %431 = vmatpush3.bf16.msra.mxu1 %v436_v3 }
   0xe   :  { %411 = vmatmul.mubr.msk.bf16.vlgmr.msra.gmra.mxu0 %vm98_vm1, %v439_v6  ;;  %419 = vmatmul.mubr.msk.bf16.vlgmr.msra.gmra.mxu1 %vm98_vm1, %v440_v7 }
   0xf   :  { %414 = vmatprep.mubr.msk.bf16.mxu0 %vm98_vm1, %v441_v8  ;;  %422 = vmatprep.mubr.msk.bf16.mxu1 %vm98_vm1, %v442_v9 }
  0x16   :  { %415 = vmatmul.mubr.msk.bf16.gmra.mxu0 %vm98_vm1, %v443_v10  ;;  %423 = vmatmul.mubr.msk.bf16.gmra.mxu1 %vm98_vm1, %v444_v11 }
  0xce   :  { %v412_v13 = vpop.f32.mrf.mxu0  ;;  %v420_v14 = vpop.f32.mrf.mxu1 }
  0xcf   :  { %v573_v15 = vadd.f32 %v412_v13, %v357_v12  ;;  %v575_v16 = vadd.f32 %v420_v14, %v357_v12 }
  0xd0   :  { %v161_v17 = vpop.f32.mrf.mxu0  ;;  %v193_v18 = vpop.f32.mrf.mxu1 }
  0xd1   :  { %v379_v19 = vmul.f32 -1.442695, %v573_v15  ;;  %v387_v20 = vmul.f32 -1.442695, %v575_v16  ;;  %v579_v21 = vadd.f32 %v357_v12, %v161_v17  ;;  %v581_v22 = vadd.f32 %v357_v12, %v193_v18 }
  0xd2   :  { %v413_v23 = vpop.f32.mrf.mxu0  ;;  %v421_v24 = vpop.f32.mrf.mxu1 }
  0xd3   :  { %445 = vpow2.f32 %v379_v19  ;;  %v377_v25 = vmul.f32 -1.442695, %v579_v21  ;;  %v385_v26 = vmul.f32 -1.442695, %v581_v22  ;;  %v585_v27 = vadd.f32 %v413_v23, %v357_v12 }
  0xd4   :  { %447 = vpow2.f32 %v387_v20  ;;  %v587_v28 = vadd.f32 %v421_v24, %v357_v12  ;;  %v164_v29 = vpop.f32.mrf.mxu0  ;;  %v196_v30 = vpop.f32.mrf.mxu1 }
  0xd5   :  { %449 = vpow2.f32 %v377_v25  ;;  %v380_v31 = vmul.f32 -1.442695, %v585_v27  ;;  %v590_v32 = vadd.f32 %v357_v12, %v164_v29  ;;  %v592_v33 = vadd.f32 %v357_v12, %v196_v30 }
  0xd6   :  { %451 = vpow2.f32 %v385_v26  ;;  %v388_v34 = vmul.f32 -1.442695, %v587_v28  ;;  %v416_v35 = vpop.f32.mrf.mxu0  ;;  %v424_v36 = vpop.f32.mrf.mxu1 }
  0xd7   :  { %453 = vpow2.f32 %v380_v31  ;;  %v378_v37 = vmul.f32 -1.442695, %v590_v32  ;;  %v386_v38 = vmul.f32 -1.442695, %v592_v33  ;;  %v597_v39 = vadd.f32 %v416_v35, %v357_v12 }
  0xd8   :  { %455 = vpow2.f32 %v388_v34  ;;  %v599_v40 = vadd.f32 %v424_v36, %v357_v12  ;;  %v177_v41 = vpop.f32.mrf.mxu0  ;;  %v209_v42 = vpop.f32.mrf.mxu1 }
  0xd9   :  { %457 = vpow2.f32 %v378_v37  ;;  %v383_v43 = vmul.f32 -1.442695, %v597_v39  ;;  %v602_v44 = vadd.f32 %v357_v12, %v177_v41  ;;  %v604_v45 = vadd.f32 %v357_v12, %v209_v42 }
  0xda   :  { %459 = vpow2.f32 %v386_v38  ;;  %v391_v46 = vmul.f32 -1.442695, %v599_v40  ;;  %v417_v47 = vpop.f32.mrf.mxu0  ;;  %v425_v48 = vpop.f32.mrf.mxu1 }
  0xdb   :  { %461 = vpow2.f32 %v383_v43  ;;  %v381_v49 = vmul.f32 -1.442695, %v602_v44  ;;  %v389_v50 = vmul.f32 -1.442695, %v604_v45  ;;  %v609_v51 = vadd.f32 %v417_v47, %v357_v12 }
  0xdc   :  { %463 = vpow2.f32 %v391_v46  ;;  %v611_v52 = vadd.f32 %v425_v48, %v357_v12  ;;  %v180_v53 = vpop.f32.mrf.mxu0  ;;  %v212_v54 = vpop.f32.mrf.mxu1 }
  0xdd   :  { %465 = vpow2.f32 %v381_v49  ;;  %v384_v55 = vmul.f32 -1.442695, %v609_v51  ;;  %v614_v56 = vadd.f32 %v357_v12, %v180_v53  ;;  %v616_v57 = vadd.f32 %v357_v12, %v212_v54 }
  0xde   :  { %467 = vpow2.f32 %v389_v50  ;;  %v392_v58 = vmul.f32 -1.442695, %v611_v52 }
  0xdf   :  { %469 = vpow2.f32 %v384_v55  ;;  %v382_v59 = vmul.f32 -1.442695, %v614_v56  ;;  %v390_v60 = vmul.f32 -1.442695, %v616_v57 }
  0xe0   :  { %v446_v61 = vpop.eup %445  ;;  %471 = vpow2.f32 %v392_v58 }
  0xe1   :  { %v448_v62 = vpop.eup %447  ;;  %v274_v63 = vadd.f32 1.0, %v446_v61  ;;  %473 = vpow2.f32 %v382_v59 }
  0xe2   :  { %v450_v0 = vpop.eup %449  ;;  %v282_v1 = vadd.f32 1.0, %v448_v62  ;;  %475 = vpow2.f32 %v390_v60 }
  0xe3   :  { %v452_v2 = vpop.eup %451  ;;  %477 = vrcp.f32 %v274_v63  ;;  %v272_v3 = vadd.f32 1.0, %v450_v0 }
  0xe4   :  { %v454_v4 = vpop.eup %453  ;;  %479 = vrcp.f32 %v282_v1  ;;  %v280_v5 = vadd.f32 1.0, %v452_v2 }
  0xe5   :  { %v456_v6 = vpop.eup %455  ;;  %481 = vrcp.f32 %v272_v3  ;;  %v275_v7 = vadd.f32 1.0, %v454_v4 }
  0xe6   :  { %v458_v8 = vpop.eup %457  ;;  %483 = vrcp.f32 %v280_v5  ;;  %v283_v9 = vadd.f32 1.0, %v456_v6 }
  0xe7   :  { %v460_v10 = vpop.eup %459  ;;  %485 = vrcp.f32 %v275_v7  ;;  %v273_v11 = vadd.f32 1.0, %v458_v8 }
  0xe8   :  { %v462_v12 = vpop.eup %461  ;;  %487 = vrcp.f32 %v283_v9  ;;  %v281_v13 = vadd.f32 1.0, %v460_v10 }
  0xe9   :  { %v464_v14 = vpop.eup %463  ;;  %489 = vrcp.f32 %v273_v11  ;;  %v278_v17 = vadd.f32 1.0, %v462_v12 }
  0xea   :  { %v466_v18 = vpop.eup %465  ;;  %491 = vrcp.f32 %v281_v13  ;;  %v286_v19 = vadd.f32 1.0, %v464_v14 }
  0xeb   :  { %v468_v20 = vpop.eup %467  ;;  %493 = vrcp.f32 %v278_v17  ;;  %v276_v23 = vadd.f32 1.0, %v466_v18 }
  0xec   :  { %v470_v24 = vpop.eup %469  ;;  %495 = vrcp.f32 %v286_v19  ;;  %v284_v25 = vadd.f32 1.0, %v468_v20 }
  0xed   :  { %v472_v26 = vpop.eup %471  ;;  %497 = vrcp.f32 %v276_v23  ;;  %v279_v29 = vadd.f32 1.0, %v470_v24 }
  0xee   :  { %v474_v30 = vpop.eup %473  ;;  %499 = vrcp.f32 %v284_v25  ;;  %v287_v31 = vadd.f32 1.0, %v472_v26 }
  0xef   :  { %v476_v34 = vpop.eup %475  ;;  %501 = vrcp.f32 %v279_v29  ;;  %v277_v35 = vadd.f32 1.0, %v474_v30 }
  0xf0   :  { %v478_v36 = vpop.eup %477  ;;  %503 = vrcp.f32 %v287_v31  ;;  %v285_v37 = vadd.f32 1.0, %v476_v34 }
  0xf1   :  { %v480_v38 = vpop.eup %479  ;;  %v322_v41 = vmul.f32 %v478_v36, %v573_v15  ;;  %505 = vrcp.f32 %v277_v35 }
  0xf2   :  { %v482_v42 = vpop.eup %481  ;;  %v330_v43 = vmul.f32 %v480_v38, %v575_v16  ;;  %507 = vrcp.f32 %v285_v37 }
  0xf3   :  { %v484_v46 = vpop.eup %483  ;;  %339 = vst.msk [vmem:[%s704_s3 + $0x10] sm:$0xff] %vm336_vm2, %v322_v41  ;;  %v320_v47 = vmul.f32 %v482_v42, %v579_v21 }
  0xf4   :  { %v486_v48 = vpop.eup %485  ;;  %347 = vst.msk [vmem:[%s704_s3 + $0x50] sm:$0xff] %vm336_vm2, %v330_v43  ;;  %v328_v15 = vmul.f32 %v484_v46, %v581_v22 }
  0xf5   :  { %v488_v49 = vpop.eup %487  ;;  %337 = vst.msk [vmem:[%s704_s3] sm:$0xff] %vm336_vm2, %v320_v47  ;;  %v323_v16 = vmul.f32 %v486_v48, %v585_v27 }
  0xf6   :  { %v490_v50 = vpop.eup %489  ;;  %345 = vst.msk [vmem:[%s704_s3 + $0x40] sm:$0xff] %vm336_vm2, %v328_v15  ;;  %v331_v21 = vmul.f32 %v488_v49, %v587_v28 }
  0xf7   :  { %v492_v53 = vpop.eup %491  ;;  %340 = vst.msk [vmem:[%s704_s3 + $0x18] sm:$0xff] %vm336_vm2, %v323_v16  ;;  %v321_v22 = vmul.f32 %v490_v50, %v590_v32 }
  0xf8   :  { %v494_v54 = vpop.eup %493  ;;  %348 = vst.msk [vmem:[%s704_s3 + $0x58] sm:$0xff] %vm336_vm2, %v331_v21  ;;  %v329_v27 = vmul.f32 %v492_v53, %v592_v33 }
  0xf9   :  { %v496_v55 = vpop.eup %495  ;;  %338 = vst.msk [vmem:[%s704_s3 + $0x8] sm:$0xff] %vm336_vm2, %v321_v22  ;;  %v326_v28 = vmul.f32 %v494_v54, %v597_v39 }
  0xfa   :  { %v498_v58 = vpop.eup %497  ;;  %346 = vst.msk [vmem:[%s704_s3 + $0x48] sm:$0xff] %vm336_vm2, %v329_v27  ;;  %v334_v32 = vmul.f32 %v496_v55, %v599_v40 }
  0xfb   :  { %v500_v59 = vpop.eup %499  ;;  %343 = vst.msk [vmem:[%s704_s3 + $0x30] sm:$0xff] %vm336_vm2, %v326_v28  ;;  %v324_v33 = vmul.f32 %v498_v58, %v602_v44 }
  0xfc   :  { %v502_v60 = vpop.eup %501  ;;  %351 = vst.msk [vmem:[%s704_s3 + $0x70] sm:$0xff] %vm336_vm2, %v334_v32  ;;  %v332_v39 = vmul.f32 %v500_v59, %v604_v45 }
  0xfd   :  { %v504_v61 = vpop.eup %503  ;;  %341 = vst.msk [vmem:[%s704_s3 + $0x20] sm:$0xff] %vm336_vm2, %v324_v33  ;;  %v327_v40 = vmul.f32 %v502_v60, %v609_v51 }
  0xfe   :  { %v506_v62 = vpop.eup %505  ;;  %349 = vst.msk [vmem:[%s704_s3 + $0x60] sm:$0xff] %vm336_vm2, %v332_v39  ;;  %v335_v44 = vmul.f32 %v504_v61, %v611_v52 }
  0xff   :  { %v508_v63 = vpop.eup %507  ;;  %344 = vst.msk [vmem:[%s704_s3 + $0x38] sm:$0xff] %vm336_vm2, %v327_v40  ;;  %v325_v45 = vmul.f32 %v506_v62, %v614_v56 }
 0x100   :  { %352 = vst.msk [vmem:[%s704_s3 + $0x78] sm:$0xff] %vm336_vm2, %v335_v44  ;;  %v333_v51 = vmul.f32 %v508_v63, %v616_v57 }
 0x101   :  { %342 = vst.msk [vmem:[%s704_s3 + $0x28] sm:$0xff] %vm336_vm2, %v325_v45 }
 0x102   :  { %350 = vst.msk [vmem:[%s704_s3 + $0x68] sm:$0xff] %vm336_vm2, %v333_v51 }

</bundles_post_ra>
